<compile_context>
chip_gen: v7x
topology: tpu7x:2x2x1
jax: 0.10.0
libtpu: 0.0.40
codegen_flags: <defaults>
</compile_context>

<pallas_src>
import functools

import jax
import jax.numpy as jnp
from jax.experimental import pallas as pl
from jax.experimental.pallas import tpu as pltpu


# ----------------------------------------------------------------------------- kernel
def adjustment_kernel(w_ref, vec_ref, x_ref, o_ref):
    """One (batch, HW-tile) step of: PReLU(W_folded @ X + shift).

    w_ref:   (Cout, Cin)   1x1-conv weight with BN scale folded in
    vec_ref: (Cout, 2)     col 0 = BN shift, col 1 = PReLU alpha
    x_ref:   (Cin, THW)    input channels x pixel columns (lane-dense)
    o_ref:   (Cout, THW)   output channels x pixel columns (lane-dense)
    """
    shift = vec_ref[:, 0:1]                                            # (Cout, 1)
    alpha = vec_ref[:, 1:2]                                            # (Cout, 1)
    y = jnp.dot(w_ref[...], x_ref[...], preferred_element_type=jnp.float32) + shift
    o_ref[...] = jnp.where(y >= 0, y, y * alpha)                       # PReLU


# ----------------------------------------------------------------------------- tiling
def _pick_hw_tile(hw, cin, cout, budget_bytes=20 << 20):
    """Largest HW-column tile: the full extent if it fits the VMEM budget,
    otherwise the biggest multiple of 128 that divides hw (lane-dense stores,
    no padding, no ragged last grid step)."""
    per_col = 2 * 4 * (cin + cout)           # double-buffered f32 in+out bytes / column
    cap = max(128, budget_bytes // per_col)
    if hw <= cap:
        return hw                             # full extent is always a legal block
    t = (min(cap, hw) // 128) * 128
    while t >= 128:
        if hw % t == 0:
            return t
        t -= 128
    # TODO(synk): hw larger than the VMEM budget and not divisible by 128 falls
    # back to a single full-row block (would need padding or a masked ragged tile).
    return hw


# ----------------------------------------------------------------------------- params
def init_params(key, c_in, c_out):
    ks = jax.random.split(key, 6)
    p = {}
    # Conv2d(c_in -> c_out, kernel=1, bias=False): weight (c_out, c_in, 1, 1) -> (c_out, c_in)
    p["w"] = jax.random.normal(ks[0], (c_out, c_in), jnp.float32) / jnp.sqrt(c_in)
    # BatchNorm2d(c_out) running stats / affine
    p["gamma"] = 1.0 + 0.1 * jax.random.normal(ks[1], (c_out,), jnp.float32)
    p["beta"] = 0.1 * jax.random.normal(ks[2], (c_out,), jnp.float32)
    p["mean"] = 0.1 * jax.random.normal(ks[3], (c_out,), jnp.float32)
    p["var"] = jax.random.uniform(ks[4], (c_out,), jnp.float32, minval=0.5, maxval=1.5)
    # PReLU(c_out)
    p["alpha"] = 0.25 + 0.05 * jax.random.normal(ks[5], (c_out,), jnp.float32)
    return p


# ----------------------------------------------------------------------------- wrapper
@jax.jit
def adjustment_pallas(x_nchw, params):
    B, Cin, H, W = x_nchw.shape
    HW = H * W
    Cout = params["w"].shape[0]

    # Fold BN (inference) into the conv weight + a per-channel shift.
    scale = params["gamma"] * jax.lax.rsqrt(params["var"] + 1e-5)      # (Cout,)
    shift = params["beta"] - params["mean"] * scale                    # (Cout,)
    w_folded = params["w"] * scale[:, None]                            # (Cout, Cin)
    vecs = jnp.stack([shift, params["alpha"]], axis=1)                 # (Cout, 2)

    # NCHW -> (B, Cin, H*W): contiguous reshape, no HBM transpose pass.
    x3 = x_nchw.reshape(B, Cin, HW)

    THW = _pick_hw_tile(HW, Cin, Cout)                                 # divides HW or == HW
    grid = (B, HW // THW)

    out3 = pl.pallas_call(
        adjustment_kernel,
        out_shape=jax.ShapeDtypeStruct((B, Cout, HW), jnp.float32),
        grid=grid,
        in_specs=[
            pl.BlockSpec((Cout, Cin), lambda b, t: (0, 0)),            # weight (resident)
            pl.BlockSpec((Cout, 2), lambda b, t: (0, 0)),              # shift / alpha
            pl.BlockSpec((None, Cin, THW), lambda b, t: (b, 0, t)),    # input tile
        ],
        out_specs=pl.BlockSpec((None, Cout, THW), lambda b, t: (b, 0, t)),
        compiler_params=pltpu.CompilerParams(
            dimension_semantics=("parallel", "parallel"),
            vmem_limit_bytes=48 << 20,
        ),
    )(w_folded, vecs, x3)

    return out3.reshape(B, Cout, H, W)                                 # free reshape, stays NCHW


# ----------------------------------------------------------------------------- reference
def adjustment_reference(x_nchw, p):
    y = jnp.einsum("bchw,oc->bohw", x_nchw, p["w"])                    # 1x1 conv, no bias
    scale = p["gamma"] / jnp.sqrt(p["var"] + 1e-5)
    shift = p["beta"] - p["mean"] * scale
    y = y * scale[None, :, None, None] + shift[None, :, None, None]    # BN (inference)
    a = p["alpha"][None, :, None, None]
    return jnp.where(y >= 0, y, y * a)                                 # PReLU


# ----------------------------------------------------------------------------- main
if __name__ == "__main__":
    key = jax.random.PRNGKey(0)
    kx, kp = jax.random.split(key)

    B, Cin, H, W = 2, 16, 16, 16        # small NCHW problem size
    Cout = 32
    x = jax.random.normal(kx, (B, Cin, H, W), jnp.float32)
    params = init_params(kp, Cin, Cout)

    y = adjustment_pallas(x, params)
    y = jax.block_until_ready(y)

    y_ref = adjustment_reference(x, params)
    assert y.shape == (B, Cout, H, W)
    err = float(jnp.max(jnp.abs(y - y_ref)))
    assert jnp.allclose(y, y_ref, rtol=1e-3, atol=1e-3), err

    print("KERNEL_OK")
</pallas_src>

<mosaic_0001>
module attributes {stable_mosaic.version = 11 : i64} {
  func.func @adjustment_kernel(%arg0: i32, %arg1: i32, %arg2: memref<32x16xf32, #tpu.memory_space<vmem>>, %arg3: memref<32x2xf32, #tpu.memory_space<vmem>>, %arg4: memref<1x16x256xf32, #tpu.memory_space<vmem>>, %arg5: memref<1x32x256xf32, #tpu.memory_space<vmem>>) attributes {dimension_semantics = [#tpu.dimension_semantics<parallel>, #tpu.dimension_semantics<parallel>], iteration_bounds = array<i64: 2, 1>, scalar_prefetch = 0 : i64, scratch_operands = 0 : i64, tpu.core_type = #tpu.core_type<tc>, window_params = [{pipeline_mode = #tpu.pipeline_mode<synchronous>, transform_indices = @transform_0, window_bounds = array<i64: 32, 16>}, {pipeline_mode = #tpu.pipeline_mode<synchronous>, transform_indices = @transform_1, window_bounds = array<i64: 32, 2>}, {transform_indices = @transform_2, window_bounds = array<i64: 1, 16, 256>}, {transform_indices = @transform_3, window_bounds = array<i64: 1, 32, 256>}]} {
    %c0 = arith.constant 0 : index
    %c0_0 = arith.constant 0 : index
    %0 = vector.load %arg3[%c0, %c0_0] : memref<32x2xf32, #tpu.memory_space<vmem>>, vector<32x1xf32>
    %c0_1 = arith.constant 0 : index
    %c1 = arith.constant 1 : index
    %1 = vector.load %arg3[%c0_1, %c1] : memref<32x2xf32, #tpu.memory_space<vmem>>, vector<32x1xf32>
    %c0_2 = arith.constant 0 : index
    %c0_3 = arith.constant 0 : index
    %2 = vector.load %arg2[%c0_2, %c0_3] : memref<32x16xf32, #tpu.memory_space<vmem>>, vector<32x16xf32>
    %c0_4 = arith.constant 0 : index
    %c0_5 = arith.constant 0 : index
    %c0_6 = arith.constant 0 : index
    %3 = vector.load %arg4[%c0_4, %c0_5, %c0_6] : memref<1x16x256xf32, #tpu.memory_space<vmem>>, vector<1x16x256xf32>
    %4 = vector.shape_cast %3 : vector<1x16x256xf32> to vector<16x256xf32>
    %cst = arith.constant dense<0.000000e+00> : vector<32x256xf32>
    %5 = tpu.matmul %2, %4, %cst {dimension_numbers = #tpu.dot_dimension_numbers<[1], [0], [0], [1], [0, 0, 1, 1], [], []>} : vector<32x16xf32>, vector<16x256xf32>, vector<32x256xf32> -> vector<32x256xf32>
    %6 = vector.broadcast %0 : vector<32x1xf32> to vector<32x256xf32>
    %7 = arith.addf %5, %6 : vector<32x256xf32>
    %cst_7 = arith.constant 0.000000e+00 : f32
    %8 = vector.broadcast %cst_7 : f32 to vector<32x256xf32>
    %9 = arith.cmpf oge, %7, %8 : vector<32x256xf32>
    %10 = vector.broadcast %1 : vector<32x1xf32> to vector<32x256xf32>
    %11 = arith.mulf %7, %10 : vector<32x256xf32>
    %12 = arith.select %9, %7, %11 : vector<32x256xi1>, vector<32x256xf32>
    %c0_8 = arith.constant 0 : index
    %c0_9 = arith.constant 0 : index
    %c0_10 = arith.constant 0 : index
    %13 = vector.load %arg5[%c0_8, %c0_9, %c0_10] : memref<1x32x256xf32, #tpu.memory_space<vmem>>, vector<1x32x256xf32>
    %14 = vector.shape_cast %13 : vector<1x32x256xf32> to vector<32x256xf32>
    %15 = vector.shape_cast %12 : vector<32x256xf32> to vector<1x32x256xf32>
    tpu.vector_store %arg5[%c0_8, %c0_9, %c0_10], %15 {strides = array<i32>} : memref<1x32x256xf32, #tpu.memory_space<vmem>>, vector<1x32x256xf32>,
    return
  }
  func.func @transform_0(%arg0: i32, %arg1: i32) -> (i32, i32) {
    %c0_i32 = arith.constant 0 : i32
    %c0_i32_0 = arith.constant 0 : i32
    %c0_i32_1 = arith.constant 0 : i32
    return %c0_i32, %c0_i32_0 : i32, i32
  }
  func.func @transform_1(%arg0: i32, %arg1: i32) -> (i32, i32) {
    %c0_i32 = arith.constant 0 : i32
    %c0_i32_0 = arith.constant 0 : i32
    %c0_i32_1 = arith.constant 0 : i32
    return %c0_i32, %c0_i32_0 : i32, i32
  }
  func.func @transform_2(%arg0: i32, %arg1: i32) -> (i32, i32, i32) {
    %c0_i32 = arith.constant 0 : i32
    %c0_i32_0 = arith.constant 0 : i32
    return %arg0, %c0_i32, %arg1 : i32, i32, i32
  }
  func.func @transform_3(%arg0: i32, %arg1: i32) -> (i32, i32, i32) {
    %c0_i32 = arith.constant 0 : i32
    %c0_i32_0 = arith.constant 0 : i32
    return %arg0, %c0_i32, %arg1 : i32, i32, i32
  }
}

</mosaic_0001>

<bundles_post_ra>
// kernel: adjustment_pallas.1
= control target key start
LH: loop header
LB: loop body
LE: loop exit
PB: predicated region body
PF: predicated region fallthrough
CT: control target
= control target key end

     0   :  { %s580_s12 = smov 0   ;;  %s582_s13 = smov 0   ;;  %s655_s0 = inlined_call_operand.vmem [shape: f32[32,16], index: 0, kind: input, shape index: {}]   ;;  %s656_s1 = inlined_call_operand.vmem [shape: f32[32,2], index: 1, kind: input, shape index: {}]   ;;  %s657_s2 = inlined_call_operand.vmem [shape: f32[2,16,256], index: 2, kind: input, shape index: {}]   ;;  %s658_s3 = inlined_call_operand.vmem [shape: f32[2,32,256], index: 3, kind: output, shape index: {}]  }
   0x1   :  { %s584_s14 = smov 0  }
   0x2 LB: > { %s25_s15 = sadd.s32 1, %s551_s13  ;;  %p483_p0 = scmp.ge.s32.totalorder %s555_s14, 1  ;;  %s555_s14 = sphi %s584_s14, %s13_s14   ;;  %s551_s13 = sphi %s582_s13, %s660_s13   ;;  %s547_s12 = sphi %s580_s12, %s659_s12  }
   0x3   : > { %p27_p1 = scmp.ge.s32.totalorder %s25_s15, 2  ;;  %p158_p2 = scmp.lt.s32.totalorder %s555_s14, 3 }
   0x5   : > { %s662_s15 = smov (%p27_p1, %s25_s15), 0  ;;  %p159_p3 = pnand %p483_p0, %p158_p2 }
   0x6   : > { %p191_p4 = scmp.lt.s32.totalorder (!%p159_p3), %s547_s12, 1  ;;  %v557_v0 = vmov (!%p159_p3), 0.0   ;;  %v212_v1 = vld [vmem:[%s656_s1 + $0x10] sm:$0xff] (!%p159_p3)  ;;  %v210_v2 = vld [vmem:[%s656_s1] sm:$0xff] (!%p159_p3)  ;;  %v558_v3 = vmov (!%p159_p3), 0   ;;  %v213_v4 = vld [vmem:[%s656_s1 + $0x18] sm:$0xff] (!%p159_p3) }
   0x7   : > { %162 = sbr.rel (%p159_p3) target bundleno = 248 (0xf8), region = 32  ;;  %319 = vmatprep.mubr.f32.mxu0 (!%p159_p3), %v557_v0  ;;  %331 = vmatprep.mubr.f32.mxu1 (!%p159_p3), %v557_v0  ;;  %v211_v5 = vld [vmem:[%s656_s1 + $0x8] sm:$0xff] (!%p159_p3)  ;;  %v214_v12 = vld [vmem:[%s655_s0] sm:$0xff] (!%p159_p3)  ;;  %vm242_vm0 = vcmask (!%p159_p3), 130048   ;;  %v216_v13 = vld [vmem:[%s655_s0 + $0x10] sm:$0xff] (!%p159_p3)  ;;  %v559_v14 = vmov (!%p159_p3), 1  }
   0x8   : > { %530 = vset.pattern.permute.xlu1 (!%p159_p3), %v558_v3  ;;  %529 = vset.pattern.permute.xlu0 (!%p159_p3), %v558_v3  ;;  %v215_v15 = vld [vmem:[%s655_s0 + $0x8] sm:$0xff] (!%p159_p3)  ;;  %v217_v16 = vld [vmem:[%s655_s0 + $0x18] sm:$0xff] (!%p159_p3) }
   0x9   : > { %234 = vperm.xlu1 (!%p159_p3), %530, %v212_v1   ;;  %224 = vperm.xlu0 (!%p159_p3), %529, %v210_v2  }
   0xd   : > { %239 = vperm.xlu1 (!%p159_p3), %530, %v213_v4   ;;  %229 = vperm.xlu0 (!%p159_p3), %529, %v211_v5  }
   0xe   : > { %s664_s12 = smov (!%p191_p4, %s547_s12), 1 }
   0xf   : > { %s494_s20 = sshll.u32 %s664_s12, 5  ;;  %s495_s9 = sshll.u32 %s664_s12, 6 }
  0x10   : > { %s198_s27 = scalar_lea.vmem %s657_s2, %s494_s20  ;;  %s636_s16 = scalar_lea.vmem %s658_s3, %s495_s9 }
  0x11   : > { %v219_v6 = vld [vmem:[%s198_s27 + $0x8] sm:$0xff]  ;;  %v221_v7 = vld [vmem:[%s198_s27 + $0x18] sm:$0xff]  ;;  %v218_v8 = vld [vmem:[%s198_s27] sm:$0xff]  ;;  %532 = vset.pattern.permute.xlu1 %v559_v14  ;;  %531 = vset.pattern.permute.xlu0 %v559_v14 }
  0x12   : > { %v496_v9 = vpack.c.bf16 %v221_v7, %v219_v6  ;;  %v220_v10 = vld [vmem:[%s198_s27 + $0x10] sm:$0xff]  ;;  %357 = vperm.xlu1 %532, %v211_v5   ;;  %353 = vperm.xlu0 %531, %v210_v2  }
  0x13   : > { %v498_v11 = vpack.c.bf16 %v220_v10, %v218_v8 }
  0x14   : > { %497 = vmatprep.subr.bf16.mxu0 %v496_v9  ;;  %500 = vmatprep.subr.bf16.mxu1 %v496_v9 }
  0x15   : > { %499 = vmatpush1.bf16.msra.mxu0 %v498_v11  ;;  %501 = vmatpush1.bf16.msra.mxu1 %v498_v11 }
  0x16   : > { %361 = vperm.xlu1 %532, %v212_v1   ;;  %365 = vperm.xlu0 %531, %v213_v4  }
  0x18   : > { %488 = vmatmul.mubr.msk.f32.vlgmr.msra.gmra.mrb[0].mxu0 %vm242_vm0, %v214_v12  ;;  %490 = vmatmul.mubr.msk.f32.vlgmr.msra.gmra.mrb[0].mxu1 %vm242_vm0, %v216_v13 }
  0x19   : > { %325 = vmatprep.mubr.f32.mxu0 %v557_v0  ;;  %337 = vmatprep.mubr.f32.mxu1 %v557_v0 }
  0x1c   : > { %489 = vmatmul.mubr.msk.f32.gmra.mrb[2].mxu0 %vm242_vm0, %v215_v15  ;;  %491 = vmatmul.mubr.msk.f32.gmra.mrb[2].mxu1 %vm242_vm0, %v217_v16 }
  0x88   : > { %v235_v17 = vpop.permute.xlu1 %234  ;;  %v225_v18 = vpop.permute.xlu0 %224 }
  0x8c   : > { %v240_v19 = vpop.permute.xlu1 %239  ;;  %v230_v20 = vpop.permute.xlu0 %229 }
  0x91   : > { %v358_v21 = vpop.permute.xlu1 %357  ;;  %v354_v22 = vpop.permute.xlu0 %353 }
  0x95   : > { %v362_v23 = vpop.permute.xlu1 %361  ;;  %v366_v46 = vpop.permute.xlu0 %365 }
  0xeb   : > { %v321_v24 = vpop.f32.mrb[0].mxu0  ;;  %v333_v25 = vpop.f32.mrb[0].mxu1 }
  0xec   : > { %v322_v26 = vadd.f32 %v321_v24, %v225_v18  ;;  %v334_v27 = vadd.f32 %v333_v25, %v235_v17  ;;  %v323_v28 = vpop.f32.mrb[1].mxu0  ;;  %v335_v29 = vpop.f32.mrb[1].mxu1 }
  0xed   : > { %v324_v30 = vadd.f32 %v323_v28, %v225_v18  ;;  %v336_v31 = vadd.f32 %v335_v29, %v235_v17 }
  0xee   : > { %vm344_vm1 = vcmp.ge.f32.partialorder %v322_v26, 0.0  ;;  %v368_v32 = vmul.f32 %v354_v22, %v322_v26  ;;  %vm348_vm2 = vcmp.ge.f32.partialorder %v334_v27, 0.0  ;;  %v372_v33 = vmul.f32 %v362_v23, %v334_v27 }
  0xef   : > { %vm345_vm3 = vcmp.ge.f32.partialorder %v324_v30, 0.0  ;;  %v369_v34 = vmul.f32 %v354_v22, %v324_v30  ;;  %vm349_vm4 = vcmp.ge.f32.partialorder %v336_v31, 0.0  ;;  %v373_v35 = vmul.f32 %v362_v23, %v336_v31  ;;  %v327_v36 = vpop.f32.mrb[2].mxu0  ;;  %v339_v37 = vpop.f32.mrb[2].mxu1 }
  0xf0   : > { %v376_v38 = vsel %vm344_vm1, %v322_v26, %v368_v32  ;;  %v380_v39 = vsel %vm348_vm2, %v334_v27, %v372_v33  ;;  %v328_v40 = vadd.f32 %v327_v36, %v230_v20  ;;  %v340_v41 = vadd.f32 %v339_v37, %v240_v19  ;;  %v329_v42 = vpop.f32.mrb[3].mxu0  ;;  %v341_v43 = vpop.f32.mrb[3].mxu1 }
  0xf1   : > { %384 = vst [vmem:[%s636_s16] sm:$0xff] %v376_v38  ;;  %v377_v44 = vsel %vm345_vm3, %v324_v30, %v369_v34  ;;  %v381_v45 = vsel %vm349_vm4, %v336_v31, %v373_v35  ;;  %388 = vst [vmem:[%s636_s16 + $0x20] sm:$0xff] %v380_v39  ;;  %v330_v47 = vadd.f32 %v329_v42, %v230_v20 }
  0xf2   : > { %v342_v48 = vadd.f32 %v341_v43, %v240_v19  ;;  %385 = vst [vmem:[%s636_s16 + $0x8] sm:$0xff] %v377_v44  ;;  %389 = vst [vmem:[%s636_s16 + $0x28] sm:$0xff] %v381_v45  ;;  %vm346_vm5 = vcmp.ge.f32.partialorder %v328_v40, 0.0  ;;  %v370_v49 = vmul.f32 %v358_v21, %v328_v40  ;;  %vm350_vm6 = vcmp.ge.f32.partialorder %v340_v41, 0.0 }
  0xf3   : > { %v374_v50 = vmul.f32 %v366_v46, %v340_v41  ;;  %vm347_vm7 = vcmp.ge.f32.partialorder %v330_v47, 0.0  ;;  %v371_v51 = vmul.f32 %v358_v21, %v330_v47 }
  0xf4   : > { %vm351_vm8 = vcmp.ge.f32.partialorder %v342_v48, 0.0  ;;  %v375_v52 = vmul.f32 %v366_v46, %v342_v48  ;;  %v378_v53 = vsel %vm346_vm5, %v328_v40, %v370_v49 }
  0xf5   : > { %v382_v54 = vsel %vm350_vm6, %v340_v41, %v374_v50  ;;  %386 = vst [vmem:[%s636_s16 + $0x10] sm:$0xff] %v378_v53  ;;  %v379_v55 = vsel %vm347_vm7, %v330_v47, %v371_v51 }
  0xf6   : > { %390 = vst [vmem:[%s636_s16 + $0x30] sm:$0xff] %v382_v54  ;;  %v383_v56 = vsel %vm351_vm8, %v342_v48, %v375_v52  ;;  %387 = vst [vmem:[%s636_s16 + $0x18] sm:$0xff] %v379_v55 }
  0xf7   : > { %391 = vst [vmem:[%s636_s16 + $0x38] sm:$0xff] %v383_v56 }
  0xf8 PF: > { %s13_s14 = sadd.s32 1, %s555_s14   ;;  %s659_s12 = smov %s551_s13 }
  0xf9   : > { %p10_p5 = scmp.ge.s32.totalorder %s13_s14, 4   ;;  %s660_s13 = smov %s662_s15 }
  0xfb   :  { %12 = sbr.rel (!%p10_p5) target bundleno = 2 (0x2), region = 62 }

</bundles_post_ra>
